<compile_context>
chip_gen: v6e
topology: v6e:2x2x1
jax: 0.10.0
libtpu: 0.0.40
codegen_flags: <defaults>
</compile_context>

<pallas_src>
import jax
import jax.numpy as jnp
from jax.experimental import pallas as pl
from jax.experimental.pallas import tpu as pltpu

N_FEATURES = 10
HIDDEN_SIZE = 1          # as in the PyTorch spec
ACTIVATE = True

_LANES = 128                        # TPU vreg lane width
_GROUP = _LANES * N_FEATURES        # 1280: one sublane row = features of 128 batch rows
_TBG_MAX = 512                      # row-groups per grid step (512 * 128 = 65536 rows)


def _cdiv(a, b):
    return (a + b - 1) // b


def _round_up(a, b):
    return _cdiv(a, b) * b


def _mlp_kernel(w_ref, b1_ref, w2_ref, b2_ref, x_ref, o_ref):
    # w_ref : (1280, 128) VMEM  block-diagonal packing of w1 (resident across the grid)
    # b1/w2/b2 : (1,) SMEM scalars
    # x_ref : (tbg, 1280) VMEM  sublane row g holds the features of 128 consecutive rows
    # o_ref : (tbg, 128)  VMEM  lane-dense sigmoid outputs
    #
    # MXU contraction: s[g, c] = sum_f x[128*g + c, f] * w1[f]   (lane-dense result)
    s = jnp.dot(x_ref[...], w_ref[...], preferred_element_type=jnp.float32)
    h = s + b1_ref[0]
    if ACTIVATE:
        h = jnp.maximum(h, 0.0)                       # ReLU
    z = h * w2_ref[0] + b2_ref[0]                     # second Linear (1 -> 1)
    z = jnp.clip(z, -30.0, 30.0)                      # keep exp finite (incl. pad rows)
    d = 1.0 + jnp.exp(-z)                             # exp on the EUP slot
    r = pl.reciprocal(d, approx=True)                 # EUP reciprocal ...
    r = r * (2.0 - d * r)                             # ... + one Newton step -> f32 exact
    o_ref[...] = r.astype(o_ref.dtype)


def _pack_w1(w1):
    """(10,) -> (1280, 128) block-diagonal: W[l, c] = w1[l % 10] if l // 10 == c else 0."""
    w1 = w1.reshape(N_FEATURES).astype(jnp.float32)
    lane = jnp.arange(_GROUP)
    sel = (lane // N_FEATURES)[:, None] == jnp.arange(_LANES)[None, :]
    return jnp.where(sel, w1[lane % N_FEATURES][:, None], jnp.float32(0.0))


def _choose_tiling(n_groups):
    """Pick (row-groups per block, grid size): big tiles, small tail padding, and
    grid >= 2 whenever the 8-sublane block rule allows (v7x megacore)."""
    if n_groups <= 8:
        return n_groups, 1                              # single full-array block
    n_steps = max(_cdiv(n_groups, _TBG_MAX), 2)
    tbg = _round_up(_cdiv(n_groups, n_steps), 8)
    return tbg, _cdiv(n_groups, tbg)


def model_s_forward(x, w1, b1, w2, b2):
    """x: (B, ...) with prod(...) == N_FEATURES -> (B, 1) float32 (== Model_s.forward)."""
    B = x.shape[0]
    x = x.reshape(B, -1).astype(jnp.float32)            # nn.Flatten
    assert x.shape[1] == N_FEATURES

    # Pad the batch to a multiple of 128 (materializes a copy only when unaligned).
    b128 = _round_up(max(B, 1), _LANES)
    if b128 != B:
        x = jnp.pad(x, ((0, b128 - B), (0, 0)))
    n_groups = b128 // _LANES
    # Free, contiguous reshape: row g = features of batch rows [128g, 128(g+1)).
    xg = x.reshape(n_groups, _GROUP)

    tbg, grid = _choose_tiling(n_groups)
    w_mat = _pack_w1(w1)

    smem = pl.BlockSpec(memory_space=pltpu.MemorySpace.SMEM)
    cost = pl.CostEstimate(
        flops=2 * n_groups * _GROUP * _LANES + 8 * b128,
        transcendentals=2 * b128,
        bytes_accessed=(n_groups * _GROUP + n_groups * _LANES
                        + _GROUP * _LANES + 3) * 4,
    )

    out = pl.pallas_call(
        _mlp_kernel,
        out_shape=jax.ShapeDtypeStruct((n_groups, _LANES), jnp.float32),
        grid=(grid,),
        in_specs=[
            pl.BlockSpec((_GROUP, _LANES), lambda i: (0, 0)),   # w_mat (fetched once)
            smem,                                               # b1 (1,)
            smem,                                               # w2 (1,)
            smem,                                               # b2 (1,)
            pl.BlockSpec((tbg, _GROUP), lambda i: (i, 0)),      # x tile (contiguous HBM)
        ],
        out_specs=pl.BlockSpec((tbg, _LANES), lambda i: (i, 0)),
        compiler_params=pltpu.CompilerParams(
            dimension_semantics=("parallel",),
            vmem_limit_bytes=32 * 1024 * 1024,
        ),
        cost_estimate=cost,
    )(
        w_mat,
        b1.reshape(1).astype(jnp.float32),
        w2.reshape(1).astype(jnp.float32),
        b2.reshape(1).astype(jnp.float32),
        xg,
    )

    out = out.reshape(b128, 1)                 # free reshape back to (rows, 1)
    return out if B == b128 else out[:B]       # slice only when padding existed


def init_params(key):
    """Deterministic init mimicking nn.Linear's uniform(-1/sqrt(fan_in), +)."""
    k1, k2, k3, k4 = jax.random.split(key, 4)
    bound1 = 1.0 / jnp.sqrt(float(N_FEATURES))
    bound2 = 1.0 / jnp.sqrt(float(HIDDEN_SIZE))
    w1 = jax.random.uniform(k1, (N_FEATURES,), jnp.float32, -bound1, bound1)
    b1 = jax.random.uniform(k2, (1,), jnp.float32, -bound1, bound1)
    w2 = jax.random.uniform(k3, (1,), jnp.float32, -bound2, bound2)
    b2 = jax.random.uniform(k4, (1,), jnp.float32, -bound2, bound2)
    return w1, b1, w2, b2


def reference_forward(x, w1, b1, w2, b2):
    x = x.reshape(x.shape[0], N_FEATURES)
    h = x @ w1.reshape(N_FEATURES, HIDDEN_SIZE) + b1.reshape(1, HIDDEN_SIZE)
    if ACTIVATE:
        h = jnp.maximum(h, 0.0)
    z = h @ w2.reshape(HIDDEN_SIZE, 1) + b2.reshape(1, 1)
    return jax.nn.sigmoid(z)


if __name__ == "__main__":
    key = jax.random.PRNGKey(0)
    kx, kp = jax.random.split(key)
    w1, b1, w2, b2 = init_params(kp)

    # batch=8   : tiny, single (1, 1280) block
    # batch=256 : 128-aligned -> zero-copy wrapper path, single block
    # batch=3000: unaligned, grid=2, partial last block
    for batch in (8, 256, 3000):
        x = jax.random.normal(jax.random.fold_in(kx, batch),
                              (batch, N_FEATURES), jnp.float32)
        out = jax.block_until_ready(model_s_forward(x, w1, b1, w2, b2))
        ref = reference_forward(x, w1, b1, w2, b2)
        assert out.shape == (batch, 1)
        assert jnp.allclose(out, ref, atol=1e-5, rtol=1e-5), \
            f"mismatch vs reference at batch={batch}"

    print("KERNEL_OK")
</pallas_src>

<mosaic_0001>
module attributes {stable_mosaic.version = 11 : i64} {
  func.func @_mlp_kernel(%arg0: i32, %arg1: memref<1280x128xf32, #tpu.memory_space<vmem>>, %arg2: memref<1xf32, #tpu.memory_space<smem>>, %arg3: memref<1xf32, #tpu.memory_space<smem>>, %arg4: memref<1xf32, #tpu.memory_space<smem>>, %arg5: memref<1x1280xf32, #tpu.memory_space<vmem>>, %arg6: memref<1x128xf32, #tpu.memory_space<vmem>>) attributes {dimension_semantics = [#tpu.dimension_semantics<parallel>], iteration_bounds = array<i64: 1>, scalar_prefetch = 0 : i64, scratch_operands = 0 : i64, tpu.core_type = #tpu.core_type<tc>, window_params = [{pipeline_mode = #tpu.pipeline_mode<synchronous>, transform_indices = @transform_0, window_bounds = array<i64: 1280, 128>}, {transform_indices = @transform_1, window_bounds = array<i64: 1>}, {transform_indices = @transform_2, window_bounds = array<i64: 1>}, {transform_indices = @transform_3, window_bounds = array<i64: 1>}, {transform_indices = @transform_4, window_bounds = array<i64: 1, 1280>}, {transform_indices = @transform_5, window_bounds = array<i64: 1, 128>}]} {
    %c0 = arith.constant 0 : index
    %c0_0 = arith.constant 0 : index
    %0 = vector.load %arg5[%c0, %c0_0] : memref<1x1280xf32, #tpu.memory_space<vmem>>, vector<1x1280xf32>
    %c0_1 = arith.constant 0 : index
    %c0_2 = arith.constant 0 : index
    %1 = vector.load %arg1[%c0_1, %c0_2] : memref<1280x128xf32, #tpu.memory_space<vmem>>, vector<1280x128xf32>
    %cst = arith.constant dense<0.000000e+00> : vector<1x128xf32>
    %2 = tpu.matmul %0, %1, %cst {dimension_numbers = #tpu.dot_dimension_numbers<[1], [0], [0], [1], [0, 0, 1, 1], [], []>} : vector<1x1280xf32>, vector<1280x128xf32>, vector<1x128xf32> -> vector<1x128xf32>
    %c0_3 = arith.constant 0 : index
    %3 = memref.load %arg2[%c0_3] : memref<1xf32, #tpu.memory_space<smem>>
    %4 = vector.broadcast %3 : f32 to vector<1x128xf32>
    %5 = arith.addf %2, %4 : vector<1x128xf32>
    %cst_4 = arith.constant 0.000000e+00 : f32
    %6 = vector.broadcast %cst_4 : f32 to vector<1x128xf32>
    %7 = arith.maximumf %5, %6 : vector<1x128xf32>
    %c0_5 = arith.constant 0 : index
    %8 = memref.load %arg3[%c0_5] : memref<1xf32, #tpu.memory_space<smem>>
    %9 = vector.broadcast %8 : f32 to vector<1x128xf32>
    %10 = arith.mulf %7, %9 : vector<1x128xf32>
    %c0_6 = arith.constant 0 : index
    %11 = memref.load %arg4[%c0_6] : memref<1xf32, #tpu.memory_space<smem>>
    %12 = vector.broadcast %11 : f32 to vector<1x128xf32>
    %13 = arith.addf %10, %12 : vector<1x128xf32>
    %cst_7 = arith.constant -3.000000e+01 : f32
    %cst_8 = arith.constant 3.000000e+01 : f32
    %14 = vector.broadcast %cst_7 : f32 to vector<1x128xf32>
    %15 = arith.maximumf %14, %13 : vector<1x128xf32>
    %16 = vector.broadcast %cst_8 : f32 to vector<1x128xf32>
    %17 = arith.minimumf %16, %15 : vector<1x128xf32>
    %cst_9 = arith.constant 0.000000e+00 : f32
    %18 = vector.broadcast %cst_9 : f32 to vector<1x128xf32>
    %19 = arith.subf %18, %17 : vector<1x128xf32>
    %20 = math.exp %19 : vector<1x128xf32>
    %cst_10 = arith.constant 1.000000e+00 : f32
    %21 = vector.broadcast %cst_10 : f32 to vector<1x128xf32>
    %22 = arith.addf %21, %20 : vector<1x128xf32>
    %23 = tpu.reciprocal %22 {approx = true} : vector<1x128xf32> -> vector<1x128xf32>
    %24 = arith.mulf %22, %23 : vector<1x128xf32>
    %cst_11 = arith.constant 2.000000e+00 : f32
    %25 = vector.broadcast %cst_11 : f32 to vector<1x128xf32>
    %26 = arith.subf %25, %24 : vector<1x128xf32>
    %27 = arith.mulf %23, %26 : vector<1x128xf32>
    %c0_12 = arith.constant 0 : index
    %c0_13 = arith.constant 0 : index
    %28 = vector.load %arg6[%c0_12, %c0_13] : memref<1x128xf32, #tpu.memory_space<vmem>>, vector<1x128xf32>
    tpu.vector_store %arg6[%c0_12, %c0_13], %27 {strides = array<i32>} : memref<1x128xf32, #tpu.memory_space<vmem>>, vector<1x128xf32>,
    return
  }
  func.func @transform_0(%arg0: i32) -> (i32, i32) {
    %c0_i32 = arith.constant 0 : i32
    %c0_i32_0 = arith.constant 0 : i32
    %c0_i32_1 = arith.constant 0 : i32
    return %c0_i32, %c0_i32_0 : i32, i32
  }
  func.func @transform_1(%arg0: i32) -> i32 {
    %c0_i32 = arith.constant 0 : i32
    %c0_i32_0 = arith.constant 0 : i32
    return %c0_i32 : i32
  }
  func.func @transform_2(%arg0: i32) -> i32 {
    %c0_i32 = arith.constant 0 : i32
    %c0_i32_0 = arith.constant 0 : i32
    return %c0_i32 : i32
  }
  func.func @transform_3(%arg0: i32) -> i32 {
    %c0_i32 = arith.constant 0 : i32
    %c0_i32_0 = arith.constant 0 : i32
    return %c0_i32 : i32
  }
  func.func @transform_4(%arg0: i32) -> (i32, i32) {
    %c0_i32 = arith.constant 0 : i32
    %c0_i32_0 = arith.constant 0 : i32
    return %arg0, %c0_i32 : i32, i32
  }
  func.func @transform_5(%arg0: i32) -> (i32, i32) {
    %c0_i32 = arith.constant 0 : i32
    %c0_i32_0 = arith.constant 0 : i32
    return %arg0, %c0_i32 : i32, i32
  }
}

</mosaic_0001>

<bundles_post_ra>
// kernel: tpu_custom_call.1
= control target key start
LH: loop header
LB: loop body
LE: loop exit
PB: predicated region body
PF: predicated region fallthrough
CT: control target
= control target key end

     0   :  { %13 = vsyncpa [#allocation6], 0  ;;  %s986_s0 = inlined_call_operand.hbm [shape: f32[1280,128], index: 0, kind: input, shape index: {}]   ;;  %s987_s1 = inlined_call_operand.<no memory space> [shape: f32[1], index: 1, kind: input, shape index: {}]   ;;  %s988_s2 = inlined_call_operand.<no memory space> [shape: f32[1], index: 2, kind: input, shape index: {}]   ;;  %s989_s3 = inlined_call_operand.<no memory space> [shape: f32[1], index: 3, kind: input, shape index: {}]   ;;  %s990_s4 = inlined_call_operand.hbm [shape: f32[1,1280], index: 4, kind: input, shape index: {}]   ;;  %s991_s5 = inlined_call_operand.hbm [shape: f32[1,128], index: 5, kind: output, shape index: {}]  }
   0x1   :  { %14 = vsyncpa [#allocation9], 0 }
   0x2   :  { %15 = vsyncpa [#allocation7], 0  ;;  %s901_s18 = smov [#allocation5]  }
   0x3   :  { %s21_s19 = sshll.u32 %s901_s18, 4  ;;  %s22_s19 = int_to_ptr.vmem [resolvable:$true] %s21_s19 }
   0x4   :  { %s843_s20 = scalar_lea.vmem %s22_s19, 20480  ;;  %p848_p1 = scmp.lt.s32.totalorder %s22_s19, %s22_s19 }
   0x5   :  { %p844_p0 = scmp.ne.s32.totalorder %s22_s19, %s843_s20  ;;  %p849_p2 = scmp.lt.s32.totalorder %s843_s20, %s843_s20 }
   0x7   :  { %p850_p3 = por %p849_p2, %p848_p1 }
   0x9   :  { %p851_p4 = pnand %p850_p3, %p844_p0 }
   0xb   :  { %854 = shalt.err (!%p851_p4)
}
   0xc   :  { %s902_s21 = smov 128   ;;  %s903_s22 = smov 8  }
   0xd   :  { %27 = dma.hbm_to_vmem [thread:$0]  %s986_s0, 20480, %s22_s19, [#allocation6], %s902_s21, %s902_s21, %s903_s22  }
   0xe   :  { %s904_s25 = smov [#allocation8]  }
   0xf   :  { %s40_s26 = sshll.u32 %s904_s25, 4  ;;  %s41_s26 = int_to_ptr.vmem [resolvable:$true] %s40_s26 }
  0x10   :  { %s863_s27 = scalar_lea.vmem %s41_s26, 160  ;;  %p868_p6 = scmp.lt.s32.totalorder %s41_s26, %s41_s26 }
  0x11   :  { %p864_p5 = scmp.ne.s32.totalorder %s41_s26, %s863_s27  ;;  %p869_p7 = scmp.lt.s32.totalorder %s863_s27, %s863_s27 }
  0x13   :  { %p870_p8 = por %p869_p7, %p868_p6 }
  0x15   :  { %p871_p9 = pnand %p870_p8, %p864_p5 }
  0x17   :  { %874 = shalt.err (!%p871_p9)
}
  0x18   :  { %43 = dma.hbm_to_vmem [thread:$0]  %s990_s4, 160, %s41_s26, [#allocation9]  }
  0x19   :  { %895 = dma.done.wait [#allocation6], 20480  }
  0x1a   :  { %896 = vsyncadd [#allocation6], 4294946816 }
  0x1b   :  { %897 = dma.done.wait [#allocation9], 160  }
  0x1c   :  { %898 = vsyncadd [#allocation9], 4294967136  ;;  %v83_v0 = vld [vmem:[#allocation5 + $0xf8] sm:$0xff]  ;;  %v82_v2 = vld [vmem:[#allocation5 + $0xf0] sm:$0xff]  ;;  %v216_v35 = vlaneseq  ;;  %s905_s8 = smov [#allocation10]  }
  0x1d   :  { %v67_v1 = vld [vmem:[#allocation5 + $0x78] sm:$0xff]  ;;  %651 = vmatprep.subr.mxu0 %v83_v0  ;;  %v66_v4 = vld [vmem:[#allocation5 + $0x70] sm:$0xff]  ;;  %v81_v6 = vld [vmem:[#allocation5 + $0xe8] sm:$0xff]  ;;  %s640_s9 = sshll.u32 %s905_s8, 4  ;;  %s641_s9 = int_to_ptr.vmem [resolvable:$true] %s640_s9 }
  0x1e   :  { %v115_v3 = vld [vmem:[#allocation5 + $0x1f8] sm:$0xff]  ;;  %652 = vmatpush3.msra.mxu0 %v67_v1  ;;  %v114_v7 = vld [vmem:[#allocation5 + $0x1f0] sm:$0xff]  ;;  %v65_v8 = vld [vmem:[#allocation5 + $0x68] sm:$0xff]  ;;  %v942_v44 = vshrl.u32 %v216_v35, 7  ;;  %p880_p11 = scmp.lt.s32.totalorder %s641_s9, %s641_s9 }
  0x1f   :  { %v99_v5 = vld [vmem:[#allocation5 + $0x178] sm:$0xff]  ;;  %686 = vmatprep.subr.mxu1 %v115_v3  ;;  %653 = vmatprep.subr.mxu0 %v82_v2  ;;  %v98_v9 = vld [vmem:[#allocation5 + $0x170] sm:$0xff]  ;;  %v113_v10 = vld [vmem:[#allocation5 + $0x1e8] sm:$0xff] }
  0x20   :  { %687 = vmatpush3.msra.mxu1 %v99_v5  ;;  %654 = vmatpush3.msra.mxu0 %v66_v4  ;;  %v80_v11 = vld [vmem:[#allocation5 + $0xe0] sm:$0xff]  ;;  %v97_v12 = vld [vmem:[#allocation5 + $0x168] sm:$0xff]  ;;  %v79_v15 = vld [vmem:[#allocation5 + $0xd8] sm:$0xff]  ;;  %v222_v53 = vsub.s32 1, %v942_v44  ;;  %v218_v59 = vsub.s32 0, %v942_v44  ;;  %v230_v1 = vsub.s32 3, %v942_v44 }
  0x21   :  { %688 = vmatprep.subr.mxu1 %v114_v7  ;;  %655 = vmatprep.subr.mxu0 %v81_v6  ;;  %v64_v13 = vld [vmem:[#allocation5 + $0x60] sm:$0xff]  ;;  %v63_v17 = vld [vmem:[#allocation5 + $0x58] sm:$0xff]  ;;  %v78_v19 = vld [vmem:[#allocation5 + $0xd0] sm:$0xff]  ;;  %v226_v3 = vsub.s32 2, %v942_v44 }
  0x22   :  { %689 = vmatpush3.msra.mxu1 %v98_v9  ;;  %v112_v14 = vld [vmem:[#allocation5 + $0x1e0] sm:$0xff]  ;;  %656 = vmatpush3.msra.mxu0 %v65_v8  ;;  %v111_v18 = vld [vmem:[#allocation5 + $0x1d8] sm:$0xff]  ;;  %v62_v21 = vld [vmem:[#allocation5 + $0x50] sm:$0xff] }
  0x23   :  { %690 = vmatprep.subr.mxu1 %v113_v10  ;;  %v96_v16 = vld [vmem:[#allocation5 + $0x160] sm:$0xff]  ;;  %657 = vmatprep.subr.mxu0 %v80_v11  ;;  %v95_v20 = vld [vmem:[#allocation5 + $0x158] sm:$0xff]  ;;  %v110_v22 = vld [vmem:[#allocation5 + $0x1d0] sm:$0xff] }
  0x24   :  { %691 = vmatpush3.msra.mxu1 %v97_v12  ;;  %658 = vmatpush3.msra.mxu0 %v64_v13  ;;  %v77_v23 = vld [vmem:[#allocation5 + $0xc8] sm:$0xff]  ;;  %v94_v24 = vld [vmem:[#allocation5 + $0x150] sm:$0xff]  ;;  %v76_v27 = vld [vmem:[#allocation5 + $0xc0] sm:$0xff] }
  0x25   :  { %692 = vmatprep.subr.mxu1 %v112_v14  ;;  %659 = vmatprep.subr.mxu0 %v79_v15  ;;  %v61_v25 = vld [vmem:[#allocation5 + $0x48] sm:$0xff]  ;;  %v60_v29 = vld [vmem:[#allocation5 + $0x40] sm:$0xff]  ;;  %v75_v31 = vld [vmem:[#allocation5 + $0xb8] sm:$0xff] }
  0x26   :  { %693 = vmatpush3.msra.mxu1 %v96_v16  ;;  %660 = vmatpush3.msra.mxu0 %v63_v17  ;;  %v109_v26 = vld [vmem:[#allocation5 + $0x1c8] sm:$0xff]  ;;  %v108_v30 = vld [vmem:[#allocation5 + $0x1c0] sm:$0xff]  ;;  %v59_v33 = vld [vmem:[#allocation5 + $0x38] sm:$0xff] }
  0x27   :  { %694 = vmatprep.subr.mxu1 %v111_v18  ;;  %661 = vmatprep.subr.mxu0 %v78_v19  ;;  %v93_v28 = vld [vmem:[#allocation5 + $0x148] sm:$0xff]  ;;  %v92_v32 = vld [vmem:[#allocation5 + $0x140] sm:$0xff]  ;;  %v107_v34 = vld [vmem:[#allocation5 + $0x1b8] sm:$0xff] }
  0x28   :  { %695 = vmatpush3.msra.mxu1 %v95_v20  ;;  %662 = vmatpush3.msra.mxu0 %v62_v21  ;;  %v74_v36 = vld [vmem:[#allocation5 + $0xb0] sm:$0xff]  ;;  %v91_v37 = vld [vmem:[#allocation5 + $0x138] sm:$0xff]  ;;  %v73_v40 = vld [vmem:[#allocation5 + $0xa8] sm:$0xff] }
  0x29   :  { %696 = vmatprep.subr.mxu1 %v110_v22  ;;  %663 = vmatprep.subr.mxu0 %v77_v23  ;;  %v58_v38 = vld [vmem:[#allocation5 + $0x30] sm:$0xff]  ;;  %v57_v42 = vld [vmem:[#allocation5 + $0x28] sm:$0xff]  ;;  %v72_v45 = vld [vmem:[#allocation5 + $0xa0] sm:$0xff] }
  0x2a   :  { %697 = vmatpush3.msra.mxu1 %v94_v24  ;;  %664 = vmatpush3.msra.mxu0 %v61_v25  ;;  %v106_v39 = vld [vmem:[#allocation5 + $0x1b0] sm:$0xff]  ;;  %v105_v43 = vld [vmem:[#allocation5 + $0x1a8] sm:$0xff]  ;;  %v56_v47 = vld [vmem:[#allocation5 + $0x20] sm:$0xff] }
  0x2b   :  { %698 = vmatprep.subr.mxu1 %v109_v26  ;;  %665 = vmatprep.subr.mxu0 %v76_v27  ;;  %v90_v41 = vld [vmem:[#allocation5 + $0x130] sm:$0xff]  ;;  %v89_v46 = vld [vmem:[#allocation5 + $0x128] sm:$0xff]  ;;  %v104_v48 = vld [vmem:[#allocation5 + $0x1a0] sm:$0xff] }
  0x2c   :  { %699 = vmatpush3.msra.mxu1 %v93_v28  ;;  %666 = vmatpush3.msra.mxu0 %v60_v29  ;;  %v71_v49 = vld [vmem:[#allocation5 + $0x98] sm:$0xff]  ;;  %v88_v50 = vld [vmem:[#allocation5 + $0x120] sm:$0xff]  ;;  %v70_v54 = vld [vmem:[#allocation5 + $0x90] sm:$0xff] }
  0x2d   :  { %700 = vmatprep.subr.mxu1 %v108_v30  ;;  %667 = vmatprep.subr.mxu0 %v75_v31  ;;  %v55_v51 = vld [vmem:[#allocation5 + $0x18] sm:$0xff]  ;;  %v945_v56 = vld [vmem:[#allocation8] sm:$0xff]  ;;  %v54_v57 = vld [vmem:[#allocation5 + $0x10] sm:$0xff] }
  0x2e   :  { %701 = vmatpush3.msra.mxu1 %v92_v32  ;;  %668 = vmatpush3.msra.mxu0 %v59_v33  ;;  %v103_v52 = vld [vmem:[#allocation5 + $0x198] sm:$0xff]  ;;  %v102_v58 = vld [vmem:[#allocation5 + $0x190] sm:$0xff]  ;;  %v69_v60 = vld [vmem:[#allocation5 + $0x88] sm:$0xff]  ;;  %v223_v0 = vrot.slane %v945_v56, %v222_v53  ;;  %v219_v6 = vrot.slane %v945_v56, %v218_v59  ;;  %v231_v10 = vrot.slane %v945_v56, %v230_v1 }
  0x2f   :  { %702 = vmatprep.subr.mxu1 %v107_v34  ;;  %669 = vmatprep.subr.mxu0 %v74_v36  ;;  %v87_v55 = vld [vmem:[#allocation5 + $0x118] sm:$0xff]  ;;  %v86_v61 = vld [vmem:[#allocation5 + $0x110] sm:$0xff]  ;;  %v53_v62 = vld [vmem:[#allocation5 + $0x8] sm:$0xff]  ;;  %v227_v12 = vrot.slane %v945_v56, %v226_v3 }
  0x30   :  { %703 = vmatpush3.msra.mxu1 %v91_v37  ;;  %670 = vmatpush3.msra.mxu0 %v58_v38  ;;  %v101_v63 = vld [vmem:[#allocation5 + $0x188] sm:$0xff]  ;;  %v68_v2 = vld [vmem:[#allocation5 + $0x80] sm:$0xff]  ;;  %v147_v8 = vld [vmem:[#allocation5 + $0x2f8] sm:$0xff] }
  0x31   :  { %704 = vmatprep.subr.mxu1 %v106_v39  ;;  %671 = vmatprep.subr.mxu0 %v73_v40  ;;  %v52_v4 = vld [vmem:[#allocation5] sm:$0xff]  ;;  %v85_v5 = vld [vmem:[#allocation5 + $0x108] sm:$0xff]  ;;  %v131_v11 = vld [vmem:[#allocation5 + $0x278] sm:$0xff] }
  0x32   :  { %705 = vmatpush3.msra.mxu1 %v90_v41  ;;  %672 = vmatpush3.msra.mxu0 %v57_v42  ;;  %v100_v7 = vld [vmem:[#allocation5 + $0x180] sm:$0xff]  ;;  %v146_v13 = vld [vmem:[#allocation5 + $0x2f0] sm:$0xff]  ;;  %v179_v14 = vld [vmem:[#allocation5 + $0x3f8] sm:$0xff] }
  0x33   :  { %706 = vmatprep.subr.mxu1 %v105_v43  ;;  %673 = vmatprep.subr.mxu0 %v72_v45  ;;  %v84_v9 = vld [vmem:[#allocation5 + $0x100] sm:$0xff]  ;;  %v130_v15 = vld [vmem:[#allocation5 + $0x270] sm:$0xff]  ;;  %v163_v16 = vld [vmem:[#allocation5 + $0x378] sm:$0xff] }
  0x34   :  { %707 = vmatpush3.msra.mxu1 %v89_v46  ;;  %674 = vmatpush3.msra.mxu0 %v56_v47  ;;  %v145_v17 = vld [vmem:[#allocation5 + $0x2e8] sm:$0xff]  ;;  %v178_v18 = vld [vmem:[#allocation5 + $0x3f0] sm:$0xff]  ;;  %v144_v21 = vld [vmem:[#allocation5 + $0x2e0] sm:$0xff] }
  0x35   :  { %708 = vmatprep.subr.mxu1 %v104_v48  ;;  %675 = vmatprep.subr.mxu0 %v71_v49  ;;  %v129_v19 = vld [vmem:[#allocation5 + $0x268] sm:$0xff]  ;;  %v162_v20 = vld [vmem:[#allocation5 + $0x370] sm:$0xff]  ;;  %v128_v23 = vld [vmem:[#allocation5 + $0x260] sm:$0xff] }
  0x36   :  { %709 = vmatpush3.msra.mxu1 %v88_v50  ;;  %676 = vmatpush3.msra.mxu0 %v55_v51  ;;  %v177_v22 = vld [vmem:[#allocation5 + $0x3e8] sm:$0xff]  ;;  %v143_v25 = vld [vmem:[#allocation5 + $0x2d8] sm:$0xff]  ;;  %v176_v26 = vld [vmem:[#allocation5 + $0x3e0] sm:$0xff] }
  0x37   :  { %710 = vmatprep.subr.mxu1 %v103_v52  ;;  %677 = vmatprep.subr.mxu0 %v70_v54  ;;  %v161_v24 = vld [vmem:[#allocation5 + $0x368] sm:$0xff]  ;;  %v127_v27 = vld [vmem:[#allocation5 + $0x258] sm:$0xff]  ;;  %v160_v28 = vld [vmem:[#allocation5 + $0x360] sm:$0xff] }
  0x38   :  { %711 = vmatpush3.msra.mxu1 %v87_v55  ;;  %678 = vmatpush3.msra.mxu0 %v54_v57  ;;  %v142_v29 = vld [vmem:[#allocation5 + $0x2d0] sm:$0xff]  ;;  %v175_v30 = vld [vmem:[#allocation5 + $0x3d8] sm:$0xff]  ;;  %v141_v33 = vld [vmem:[#allocation5 + $0x2c8] sm:$0xff] }
  0x39   :  { %712 = vmatprep.subr.mxu1 %v102_v58  ;;  %679 = vmatprep.subr.mxu0 %v69_v60  ;;  %v126_v31 = vld [vmem:[#allocation5 + $0x250] sm:$0xff]  ;;  %v159_v32 = vld [vmem:[#allocation5 + $0x358] sm:$0xff]  ;;  %v125_v35 = vld [vmem:[#allocation5 + $0x248] sm:$0xff] }
  0x3a   :  { %713 = vmatpush3.msra.mxu1 %v86_v61  ;;  %680 = vmatpush3.msra.mxu0 %v53_v62  ;;  %v174_v34 = vld [vmem:[#allocation5 + $0x3d0] sm:$0xff]  ;;  %v140_v37 = vld [vmem:[#allocation5 + $0x2c0] sm:$0xff]  ;;  %v173_v38 = vld [vmem:[#allocation5 + $0x3c8] sm:$0xff] }
  0x3b   :  { %714 = vmatprep.subr.mxu1 %v101_v63  ;;  %681 = vmatprep.subr.mxu0 %v68_v2  ;;  %v158_v36 = vld [vmem:[#allocation5 + $0x350] sm:$0xff]  ;;  %v124_v39 = vld [vmem:[#allocation5 + $0x240] sm:$0xff]  ;;  %v157_v40 = vld [vmem:[#allocation5 + $0x348] sm:$0xff] }
  0x3c   :  { %330 = vmatprep.mubr.f32.mxu0 %v223_v0  ;;  %682 = vmatpush3.msra.mxu0 %v52_v4  ;;  %v139_v41 = vld [vmem:[#allocation5 + $0x2b8] sm:$0xff]  ;;  %v172_v42 = vld [vmem:[#allocation5 + $0x3c0] sm:$0xff]  ;;  %v138_v46 = vld [vmem:[#allocation5 + $0x2b0] sm:$0xff]  ;;  %v238_v4 = vsub.s32 5, %v942_v44 }
  0x3d   :  { %715 = vmatpush3.msra.mxu1 %v85_v5  ;;  %331 = vmatmul.mubr.f32.vlgmr.msra.gmra.mxu0 %v219_v6  ;;  %v123_v43 = vld [vmem:[#allocation5 + $0x238] sm:$0xff]  ;;  %v156_v45 = vld [vmem:[#allocation5 + $0x340] sm:$0xff]  ;;  %v122_v48 = vld [vmem:[#allocation5 + $0x230] sm:$0xff] }
  0x3e   :  { %716 = vmatprep.subr.mxu1 %v100_v7  ;;  %721 = vmatprep.subr.mxu0 %v147_v8  ;;  %v171_v47 = vld [vmem:[#allocation5 + $0x3b8] sm:$0xff]  ;;  %v137_v50 = vld [vmem:[#allocation5 + $0x2a8] sm:$0xff]  ;;  %v170_v51 = vld [vmem:[#allocation5 + $0x3b0] sm:$0xff]  ;;  %v234_v7 = vsub.s32 4, %v942_v44 }
  0x3f   :  { %717 = vmatpush3.msra.mxu1 %v84_v9  ;;  %400 = vmatprep.mubr.f32.mxu1 %v231_v10  ;;  %v155_v49 = vld [vmem:[#allocation5 + $0x338] sm:$0xff]  ;;  %v121_v52 = vld [vmem:[#allocation5 + $0x228] sm:$0xff]  ;;  %v154_v54 = vld [vmem:[#allocation5 + $0x330] sm:$0xff] }
  0x40   :  { %722 = vmatpush3.msra.mxu0 %v131_v11  ;;  %401 = vmatmul.mubr.f32.vlgmr.msra.gmra.mxu1 %v227_v12  ;;  %v136_v55 = vld [vmem:[#allocation5 + $0x2a0] sm:$0xff]  ;;  %v169_v57 = vld [vmem:[#allocation5 + $0x3a8] sm:$0xff]  ;;  %v135_v61 = vld [vmem:[#allocation5 + $0x298] sm:$0xff]  ;;  %v246_v12 = vsub.s32 7, %v942_v44 }
  0x41   :  { %723 = vmatprep.subr.mxu0 %v146_v13  ;;  %756 = vmatprep.subr.mxu1 %v179_v14  ;;  %v120_v58 = vld [vmem:[#allocation5 + $0x220] sm:$0xff]  ;;  %v153_v60 = vld [vmem:[#allocation5 + $0x328] sm:$0xff]  ;;  %v119_v63 = vld [vmem:[#allocation5 + $0x218] sm:$0xff] }
  0x42   :  { %724 = vmatpush3.msra.mxu0 %v130_v15  ;;  %757 = vmatpush3.msra.mxu1 %v163_v16  ;;  %v168_v62 = vld [vmem:[#allocation5 + $0x3a0] sm:$0xff]  ;;  %v134_v1 = vld [vmem:[#allocation5 + $0x290] sm:$0xff]  ;;  %v167_v2 = vld [vmem:[#allocation5 + $0x398] sm:$0xff]  ;;  %v239_v15 = vrot.slane %v945_v56, %v238_v4  ;;  %v242_v16 = vsub.s32 6, %v942_v44 }
  0x43   :  { %725 = vmatprep.subr.mxu0 %v145_v17  ;;  %758 = vmatprep.subr.mxu1 %v178_v18  ;;  %v152_v0 = vld [vmem:[#allocation5 + $0x320] sm:$0xff]  ;;  %v118_v3 = vld [vmem:[#allocation5 + $0x210] sm:$0xff]  ;;  %v151_v5 = vld [vmem:[#allocation5 + $0x318] sm:$0xff]  ;;  %v235_v18 = vrot.slane %v945_v56, %v234_v7 }
  0x44   :  { %726 = vmatpush3.msra.mxu0 %v129_v19  ;;  %759 = vmatpush3.msra.mxu1 %v162_v20  ;;  %v133_v6 = vld [vmem:[#allocation5 + $0x288] sm:$0xff]  ;;  %v166_v8 = vld [vmem:[#allocation5 + $0x390] sm:$0xff]  ;;  %v132_v11 = vld [vmem:[#allocation5 + $0x280] sm:$0xff] }
  0x45   :  { %727 = vmatprep.subr.mxu0 %v144_v21  ;;  %760 = vmatprep.subr.mxu1 %v177_v22  ;;  %v117_v9 = vld [vmem:[#allocation5 + $0x208] sm:$0xff]  ;;  %v150_v10 = vld [vmem:[#allocation5 + $0x310] sm:$0xff]  ;;  %v116_v14 = vld [vmem:[#allocation5 + $0x200] sm:$0xff] }
  0x46   :  { %728 = vmatpush3.msra.mxu0 %v128_v23  ;;  %761 = vmatpush3.msra.mxu1 %v161_v24  ;;  %v165_v13 = vld [vmem:[#allocation5 + $0x388] sm:$0xff]  ;;  %v164_v19 = vld [vmem:[#allocation5 + $0x380] sm:$0xff]  ;;  %v211_v21 = vld [vmem:[#allocation5 + $0x4f8] sm:$0xff]  ;;  %v247_v23 = vrot.slane %v945_v56, %v246_v12 }
  0x47   :  { %729 = vmatprep.subr.mxu0 %v143_v25  ;;  %762 = vmatprep.subr.mxu1 %v176_v26  ;;  %v149_v17 = vld [vmem:[#allocation5 + $0x308] sm:$0xff]  ;;  %v148_v22 = vld [vmem:[#allocation5 + $0x300] sm:$0xff]  ;;  %v195_v24 = vld [vmem:[#allocation5 + $0x478] sm:$0xff]  ;;  %v243_v25 = vrot.slane %v945_v56, %v242_v16 }
  0x48   :  { %730 = vmatpush3.msra.mxu0 %v127_v27  ;;  %763 = vmatpush3.msra.mxu1 %v160_v28  ;;  %v964_v20 = vld [vmem:[#allocation8 + $0x8] sm:$0x3]  ;;  %v210_v26 = vld [vmem:[#allocation5 + $0x4f0] sm:$0xff]  ;;  %v192_v56 = vld [vmem:[#allocation5 + $0x460] sm:$0xff] }
  0x49   :  { %731 = vmatprep.subr.mxu0 %v142_v29  ;;  %764 = vmatprep.subr.mxu1 %v175_v30  ;;  %v255_v27 = vrot.slane %v964_v20, %v222_v53  ;;  %v194_v28 = vld [vmem:[#allocation5 + $0x470] sm:$0xff]  ;;  %v209_v29 = vld [vmem:[#allocation5 + $0x4e8] sm:$0xff] }
  0x4a   :  { %732 = vmatpush3.msra.mxu0 %v126_v31  ;;  %765 = vmatpush3.msra.mxu1 %v159_v32  ;;  %v193_v30 = vld [vmem:[#allocation5 + $0x468] sm:$0xff]  ;;  %v208_v31 = vld [vmem:[#allocation5 + $0x4e0] sm:$0xff]  ;;  %v207_v32 = vld [vmem:[#allocation5 + $0x4d8] sm:$0xff] }
  0x4b   :  { %733 = vmatprep.subr.mxu0 %v141_v33  ;;  %766 = vmatprep.subr.mxu1 %v174_v34  ;;  %v191_v33 = vld [vmem:[#allocation5 + $0x458] sm:$0xff]  ;;  %v206_v53 = vld [vmem:[#allocation5 + $0x4d0] sm:$0xff] }
  0x4c   :  { %734 = vmatpush3.msra.mxu0 %v125_v35  ;;  %767 = vmatpush3.msra.mxu1 %v158_v36  ;;  %v190_v34 = vld [vmem:[#allocation5 + $0x450] sm:$0xff]  ;;  %v205_v35 = vld [vmem:[#allocation5 + $0x4c8] sm:$0xff] }
  0x4d   :  { %735 = vmatprep.subr.mxu0 %v140_v37  ;;  %768 = vmatprep.subr.mxu1 %v173_v38  ;;  %v189_v36 = vld [vmem:[#allocation5 + $0x448] sm:$0xff]  ;;  %v204_v37 = vld [vmem:[#allocation5 + $0x4c0] sm:$0xff] }
  0x4e   :  { %736 = vmatpush3.msra.mxu0 %v124_v39  ;;  %769 = vmatpush3.msra.mxu1 %v157_v40  ;;  %v188_v38 = vld [vmem:[#allocation5 + $0x440] sm:$0xff]  ;;  %v203_v39 = vld [vmem:[#allocation5 + $0x4b8] sm:$0xff] }
  0x4f   :  { %737 = vmatprep.subr.mxu0 %v139_v41  ;;  %770 = vmatprep.subr.mxu1 %v172_v42  ;;  %v187_v40 = vld [vmem:[#allocation5 + $0x438] sm:$0xff]  ;;  %v202_v41 = vld [vmem:[#allocation5 + $0x4b0] sm:$0xff] }
  0x50   :  { %738 = vmatpush3.msra.mxu0 %v123_v43  ;;  %771 = vmatpush3.msra.mxu1 %v156_v45  ;;  %v186_v42 = vld [vmem:[#allocation5 + $0x430] sm:$0xff]  ;;  %v201_v43 = vld [vmem:[#allocation5 + $0x4a8] sm:$0xff] }
  0x51   :  { %739 = vmatprep.subr.mxu0 %v138_v46  ;;  %772 = vmatprep.subr.mxu1 %v171_v47  ;;  %v185_v45 = vld [vmem:[#allocation5 + $0x428] sm:$0xff]  ;;  %v200_v46 = vld [vmem:[#allocation5 + $0x4a0] sm:$0xff] }
  0x52   :  { %740 = vmatpush3.msra.mxu0 %v122_v48  ;;  %773 = vmatpush3.msra.mxu1 %v155_v49  ;;  %v184_v47 = vld [vmem:[#allocation5 + $0x420] sm:$0xff]  ;;  %v199_v48 = vld [vmem:[#allocation5 + $0x498] sm:$0xff] }
  0x53   :  { %741 = vmatprep.subr.mxu0 %v137_v50  ;;  %774 = vmatprep.subr.mxu1 %v170_v51  ;;  %v183_v49 = vld [vmem:[#allocation5 + $0x418] sm:$0xff]  ;;  %v198_v50 = vld [vmem:[#allocation5 + $0x490] sm:$0xff] }
  0x54   :  { %742 = vmatpush3.msra.mxu0 %v121_v52  ;;  %775 = vmatpush3.msra.mxu1 %v154_v54  ;;  %v182_v51 = vld [vmem:[#allocation5 + $0x410] sm:$0xff]  ;;  %v197_v52 = vld [vmem:[#allocation5 + $0x488] sm:$0xff] }
  0x55   :  { %743 = vmatprep.subr.mxu0 %v136_v55  ;;  %776 = vmatprep.subr.mxu1 %v169_v57  ;;  %v181_v54 = vld [vmem:[#allocation5 + $0x408] sm:$0xff]  ;;  %v196_v55 = vld [vmem:[#allocation5 + $0x480] sm:$0xff] }
  0x56   :  { %744 = vmatpush3.msra.mxu0 %v120_v58  ;;  %777 = vmatpush3.msra.mxu1 %v153_v60  ;;  %v180_v57 = vld [vmem:[#allocation5 + $0x400] sm:$0xff]  ;;  %v251_v58 = vrot.slane %v964_v20, %v218_v59 }
  0x57   :  { %745 = vmatprep.subr.mxu0 %v135_v61  ;;  %778 = vmatprep.subr.mxu1 %v168_v62 }
  0x58   :  { %746 = vmatpush3.msra.mxu0 %v119_v63  ;;  %779 = vmatpush3.msra.mxu1 %v152_v0 }
  0x59   :  { %747 = vmatprep.subr.mxu0 %v134_v1  ;;  %780 = vmatprep.subr.mxu1 %v167_v2  ;;  %v213_v1 = vstv %s987_s1 }
  0x5a   :  { %748 = vmatpush3.msra.mxu0 %v118_v3  ;;  %781 = vmatpush3.msra.mxu1 %v151_v5 }
  0x5b   :  { %749 = vmatprep.subr.mxu0 %v133_v6  ;;  %782 = vmatprep.subr.mxu1 %v166_v8 }
  0x5c   :  { %750 = vmatpush3.msra.mxu0 %v117_v9  ;;  %783 = vmatpush3.msra.mxu1 %v150_v10 }
  0x5d   :  { %751 = vmatprep.subr.mxu0 %v132_v11  ;;  %784 = vmatprep.subr.mxu1 %v165_v13 }
  0x5e   :  { %752 = vmatpush3.msra.mxu0 %v116_v14  ;;  %470 = vmatprep.mubr.f32.mxu0 %v239_v15  ;;  %v618_v15 = vstv %s988_s2  ;;  %s875_s2 = scalar_lea.vmem %s641_s9, 16 }
  0x5f   :  { %785 = vmatpush3.msra.mxu1 %v149_v17  ;;  %471 = vmatmul.mubr.f32.vlgmr.msra.gmra.mxu0 %v235_v18  ;;  %v621_v17 = vstv %s989_s3  ;;  %p876_p10 = scmp.ne.s32.totalorder %s641_s9, %s875_s2  ;;  %s879_s3 = scalar_lea.vmem %s641_s9, 32 }
  0x60   :  { %786 = vmatprep.subr.mxu1 %v164_v19  ;;  %791 = vmatprep.subr.mxu0 %v211_v21  ;;  %p881_p12 = scmp.lt.s32.totalorder %s879_s3, %s875_s2 }
  0x61   :  { %787 = vmatpush3.msra.mxu1 %v148_v22  ;;  %540 = vmatprep.mubr.f32.mxu1 %v247_v23 }
  0x62   :  { %792 = vmatpush3.msra.mxu0 %v195_v24  ;;  %541 = vmatmul.mubr.f32.vlgmr.msra.gmra.mxu1 %v243_v25  ;;  %p882_p13 = por %p881_p12, %p880_p11 }
  0x63   :  { %793 = vmatprep.subr.mxu0 %v210_v26  ;;  %610 = vmatprep.mubr.f32.mxu0 %v255_v27 }
  0x64   :  { %794 = vmatpush3.msra.mxu0 %v194_v28  ;;  %p883_p0 = pnand %p882_p13, %p876_p10 }
  0x65   :  { %795 = vmatprep.subr.mxu0 %v209_v29 }
  0x66   :  { %796 = vmatpush3.msra.mxu0 %v193_v30 }
  0x67   :  { %797 = vmatprep.subr.mxu0 %v208_v31 }
  0x68   :  { %798 = vmatpush3.msra.mxu0 %v192_v56 }
  0x69   :  { %799 = vmatprep.subr.mxu0 %v207_v32 }
  0x6a   :  { %800 = vmatpush3.msra.mxu0 %v191_v33 }
  0x6b   :  { %801 = vmatprep.subr.mxu0 %v206_v53 }
  0x6c   :  { %802 = vmatpush3.msra.mxu0 %v190_v34 }
  0x6d   :  { %803 = vmatprep.subr.mxu0 %v205_v35 }
  0x6e   :  { %804 = vmatpush3.msra.mxu0 %v189_v36 }
  0x6f   :  { %805 = vmatprep.subr.mxu0 %v204_v37 }
  0x70   :  { %806 = vmatpush3.msra.mxu0 %v188_v38 }
  0x71   :  { %807 = vmatprep.subr.mxu0 %v203_v39 }
  0x72   :  { %808 = vmatpush3.msra.mxu0 %v187_v40 }
  0x73   :  { %809 = vmatprep.subr.mxu0 %v202_v41 }
  0x74   :  { %810 = vmatpush3.msra.mxu0 %v186_v42 }
  0x75   :  { %811 = vmatprep.subr.mxu0 %v201_v43 }
  0x76   :  { %812 = vmatpush3.msra.mxu0 %v185_v45 }
  0x77   :  { %813 = vmatprep.subr.mxu0 %v200_v46 }
  0x78   :  { %814 = vmatpush3.msra.mxu0 %v184_v47 }
  0x79   :  { %815 = vmatprep.subr.mxu0 %v199_v48 }
  0x7a   :  { %816 = vmatpush3.msra.mxu0 %v183_v49 }
  0x7b   :  { %817 = vmatprep.subr.mxu0 %v198_v50 }
  0x7c   :  { %818 = vmatpush3.msra.mxu0 %v182_v51 }
  0x7d   :  { %819 = vmatprep.subr.mxu0 %v197_v52 }
  0x7e   :  { %820 = vmatpush3.msra.mxu0 %v181_v54 }
  0x7f   :  { %821 = vmatprep.subr.mxu0 %v196_v55 }
  0x80   :  { %822 = vmatpush3.msra.mxu0 %v180_v57 }
  0x81   :  { %611 = vmatmul.mubr.f32.vlgmr.msra.gmra.mxu0 %v251_v58 }
  0xfd   :  { %v683_v60 = vpop.f32.mrf.mxu0 }
  0xff   :  { %v684_v61 = vpop.f32.mrf.mxu0 }
 0x100   :  { %v718_v62 = vpop.f32.mrf.mxu1  ;;  %v685_v0 = vadd.f32 %v684_v61, %v683_v60 }
 0x102   :  { %v719_v2 = vpop.f32.mrf.mxu1  ;;  %v333_v5 = vadd.f32 %v685_v0, %v213_v1 }
 0x103   :  { %v720_v44 = vadd.f32 %v719_v2, %v718_v62 }
 0x105   :  { %v403_v7 = vadd.f32 %v720_v44, %v333_v5 }
 0x11f   :  { %v753_v63 = vpop.f32.mrf.mxu0 }
 0x121   :  { %v754_v3 = vpop.f32.mrf.mxu0 }
 0x122   :  { %v788_v4 = vpop.f32.mrf.mxu1  ;;  %v755_v6 = vadd.f32 %v754_v3, %v753_v63 }
 0x124   :  { %v789_v59 = vpop.f32.mrf.mxu1  ;;  %v473_v8 = vadd.f32 %v755_v6, %v403_v7 }
 0x125   :  { %v790_v9 = vadd.f32 %v789_v59, %v788_v4 }
 0x127   :  { %v543_v12 = vadd.f32 %v790_v9, %v473_v8 }
 0x141   :  { %v823_v10 = vpop.f32.mrf.mxu0 }
 0x143   :  { %v824_v11 = vpop.f32.mrf.mxu0 }
 0x144   :  { %v825_v13 = vadd.f32 %v824_v11, %v823_v10 }
 0x146   :  { %v613_v14 = vadd.f32 %v825_v13, %v543_v12 }
 0x148   :  { %v616_v16 = vmax.f32 %v613_v14, 0.0 }
 0x14a   :  { %v619_v18 = vmul.f32 %v618_v15, %v616_v16 }
 0x14c   :  { %v622_v19 = vadd.f32 %v621_v17, %v619_v18 }
 0x14e   :  { %v650_v20 = vclamps-f32 %v622_v19, 30.0 }
 0x150   :  { %v625_v21 = vsub.f32 0.0, %v650_v20 }
 0x152   :  { %v626_v22 = vmul.f32 1.442695, %v625_v21 }
 0x154   :  { %831 = vpow2.f32 %v626_v22 }
 0x161   :  { %v832_v23 = vpop.eup %831 }
 0x162   :  { %v628_v24 = vadd.f32 1.0, %v832_v23 }
 0x164   :  { %833 = vrcp.f32 %v628_v24 }
 0x171   :  { %v834_v25 = vpop.eup %833 }
 0x172   :  { %v630_v26 = vmul.f32 %v834_v25, %v628_v24 }
 0x174   :  { %v631_v27 = vsub.f32 2.0, %v630_v26 }
 0x176   :  { %v632_v28 = vmul.f32 %v834_v25, %v631_v27 }
 0x178   :  { %633 = vst [vmem:[#allocation10] sm:$0x1] %v632_v28 }
 0x179   :  { %886 = shalt.err (!%p883_p0)
}
 0x17a   :  { %643 = dma.vmem_to_hbm [thread:$0]  %s641_s9, 16, %s991_s5, [#allocation7]  }
 0x17b   :  { %899 = dma.done.wait [#allocation7], 16  }
 0x17c   :  { %900 = vsyncadd [#allocation7], 4294967280 }
 0x17d   :  { %647 = vsyncpa [#allocation6], 1 }
 0x17e   :  { %648 = vsyncpa [#allocation9], 1 }
 0x17f   :  { %649 = vsyncpa [#allocation7], 1 }

</bundles_post_ra>
